<compile_context>
chip_gen: v7x
topology: tpu7x:2x2x1
jax: 0.10.0
libtpu: 0.0.40
codegen_flags: <defaults>
</compile_context>

<pallas_src>
import jax
import jax.numpy as jnp
from jax import lax
from jax.experimental import pallas as pl
from jax.experimental.pallas import tpu as pltpu


def _chip_budgets():
    """(target f32 block bytes, vmem_limit_bytes) tuned per TPU generation."""
    try:
        info = pltpu.get_tpu_info()
        vmem_cap = int(getattr(info, "vmem_capacity_bytes", 128 * 1024 * 1024))
    except Exception:
        vmem_cap = 128 * 1024 * 1024
    if vmem_cap >= 100 * 1024 * 1024:
        # v5e / v6e: 128 MiB VMEM -> big blocks, fewer grid-step overheads.
        return 6 * 1024 * 1024, 64 * 1024 * 1024
    # v7x: 64 MiB VMEM per TensorCore (32 MiB scoped default) -> stay small so
    # double-buffered input + f32 temps keep fitting.
    return 3 * 1024 * 1024, 32 * 1024 * 1024


def variation_loss(image: jax.Array, k_size: int) -> jax.Array:
    """Pallas TPU implementation of VariationLoss.forward (NCHW input)."""
    B, C, H, W = image.shape
    K = int(k_size)
    assert 0 < K < H and K < W, "k_size must be smaller than spatial dims"

    BC = B * C
    HW = H * W

    # Constants folded into the per-block partial sums:
    #   loss = sum_h / (BC*(H-K)*W * 3*H*W) + sum_w / (BC*H*(W-K) * 3*H*W)
    c_h = 1.0 / (float(BC * (H - K) * W) * 3.0 * H * W)
    c_w = 1.0 / (float(BC * H * (W - K)) * 3.0 * H * W)

    # Lane-dense flattened view: one row per (b, c) plane (pure reshape).
    xf = image.reshape(BC, HW)

    # --- block selection: whole planes per block, f32-footprint budget -------
    target_block_bytes, vmem_limit = _chip_budgets()
    plane_f32_bytes = HW * 4
    budget_planes = max(1, target_block_bytes // plane_f32_bytes)
    if BC <= budget_planes:
        tbc = BC                                  # single (or few) big block(s)
    else:
        # multiple of 8 so the (tbc, HW) BlockSpec stays (8,128)-legal
        tbc = min(BC, max(8, (budget_planes // 8) * 8))
    # TODO(synk): for planes much larger than the block budget (e.g. 4K f32
    # images, ~64 MiB/plane) tile the flattened axis in W-multiples with a
    # K*W halo instead of loading whole planes.

    # Pad with zero rows so tbc divides the row count; zero rows contribute 0
    # to both sums (all diffs are intra-row) and the divisors use original BC.
    BCp = BC if BC % tbc == 0 else ((BC + tbc - 1) // tbc) * tbc
    if BCp != BC:
        xf = jnp.concatenate(
            [xf, jnp.zeros((BCp - BC, HW), dtype=xf.dtype)], axis=0)
    num_blocks = BCp // tbc

    shift_h = K * W  # flattened offset of the vertical neighbour
    shift_w = K      # flattened offset of the horizontal neighbour

    def kernel(x_ref, out_ref):
        x = x_ref[...].astype(jnp.float32)                    # (tbc, HW)

        # H-term: pairs (p, p + K*W) for p < (H-K)*W -- plain slices, no mask.
        dh = x[:, shift_h:] - x[:, : HW - shift_h]            # (tbc, (H-K)*W)
        sum_h = jnp.sum(dh * dh, keepdims=True)               # (1, 1)

        # W-term: pairs (p, p + K), valid where (p mod W) < W - K.  Mask is
        # generated in-kernel from an iota and pre-scaled by c_w (0/1 mask).
        dw = x[:, shift_w:] - x[:, : HW - shift_w]            # (tbc, HW-K)
        col = lax.broadcasted_iota(jnp.int32, (1, HW - shift_w), 1) % W
        w_scale = jnp.where(col < (W - K),
                            jnp.float32(c_w), jnp.float32(0.0))
        sum_w = jnp.sum(dw * dw * w_scale, keepdims=True)     # (1, 1)

        partial = sum_h * c_h + sum_w                         # (1, 1), f32
        # Lane-dense (1, 1, 128) store of the per-block partial sum.
        out_ref[...] = jnp.broadcast_to(
            jnp.reshape(partial, (1, 1, 1)), (1, 1, 128))

    out = pl.pallas_call(
        kernel,
        out_shape=jax.ShapeDtypeStruct((num_blocks, 1, 128), jnp.float32),
        grid=(num_blocks,),
        in_specs=[pl.BlockSpec((tbc, HW), lambda g: (g, 0))],
        out_specs=pl.BlockSpec((1, 1, 128), lambda g: (g, 0, 0)),
        compiler_params=pltpu.CompilerParams(
            # Each grid step writes its own output block -> fully parallel
            # (megacore-shardable on v7x).
            dimension_semantics=("parallel",),
            vmem_limit_bytes=vmem_limit,
        ),
    )(xf)

    # Every lane of a block holds the same partial; take lane 0 and reduce.
    return jnp.sum(out[:, 0, 0])


def variation_loss_ref(image: jax.Array, k_size: int) -> jax.Array:
    """Pure-JAX reference (mirrors the PyTorch forward)."""
    _, _, h, w = image.shape
    k = k_size
    tv_h = jnp.mean((image[:, :, k:, :] - image[:, :, :-k, :]) ** 2)
    tv_w = jnp.mean((image[:, :, :, k:] - image[:, :, :, :-k]) ** 2)
    return (tv_h + tv_w) / (3.0 * h * w)


if __name__ == "__main__":
    # VariationLoss has no learnable parameters; the only "config" is k_size.
    K_SIZE = 1
    B, C, H, W = 2, 4, 16, 16

    key = jax.random.PRNGKey(0)
    image = jax.random.normal(key, (B, C, H, W), dtype=jnp.float32)

    loss = jax.block_until_ready(variation_loss(image, K_SIZE))
    ref = jax.block_until_ready(variation_loss_ref(image, K_SIZE))
    assert jnp.allclose(loss, ref, rtol=1e-5, atol=1e-6), (loss, ref)

    print("KERNEL_OK")
</pallas_src>

<mosaic_0001>
module attributes {stable_mosaic.version = 11 : i64} {
  func.func @kernel(%arg0: i32, %arg1: memref<8x256xf32, #tpu.memory_space<vmem>>, %arg2: memref<1x1x128xf32, #tpu.memory_space<vmem>>) attributes {dimension_semantics = [#tpu.dimension_semantics<parallel>], iteration_bounds = array<i64: 1>, scalar_prefetch = 0 : i64, scratch_operands = 0 : i64, tpu.core_type = #tpu.core_type<tc>, window_params = [{transform_indices = @transform_0, window_bounds = array<i64: 8, 256>}, {transform_indices = @transform_1, window_bounds = array<i64: 1, 1, 128>}]} {
    %c0 = arith.constant 0 : index
    %c0_0 = arith.constant 0 : index
    %0 = vector.load %arg1[%c0, %c0_0] : memref<8x256xf32, #tpu.memory_space<vmem>>, vector<8x256xf32>
    %1 = vector.extract_strided_slice %0 {offsets = [0, 16], sizes = [8, 240], strides = [1, 1]} : vector<8x256xf32> to vector<8x240xf32>
    %2 = vector.extract_strided_slice %0 {offsets = [0, 0], sizes = [8, 240], strides = [1, 1]} : vector<8x256xf32> to vector<8x240xf32>
    %3 = arith.subf %1, %2 : vector<8x240xf32>
    %4 = arith.mulf %3, %3 : vector<8x240xf32>
    %5 = vector.shape_cast %4 : vector<8x240xf32> to vector<1x8x240xf32>
    %cst = arith.constant dense<0.000000e+00> : vector<1xf32>
    %6 = vector.multi_reduction <add>, %5, %cst [1, 2] : vector<1x8x240xf32> to vector<1xf32>
    %7 = vector.shape_cast %6 : vector<1xf32> to vector<1x1x1xf32>
    %8 = vector.extract %7[0, 0, 0] : f32 from vector<1x1x1xf32>
    %9 = vector.broadcast %8 : f32 to vector<1x1xf32>
    %10 = vector.extract_strided_slice %0 {offsets = [0, 1], sizes = [8, 255], strides = [1, 1]} : vector<8x256xf32> to vector<8x255xf32>
    %11 = vector.extract_strided_slice %0 {offsets = [0, 0], sizes = [8, 255], strides = [1, 1]} : vector<8x256xf32> to vector<8x255xf32>
    %12 = arith.subf %10, %11 : vector<8x255xf32>
    %13 = tpu.iota {dimensions = array<i32: 1>} : vector<1x255xi32>
    %c16_i32 = arith.constant 16 : i32
    %c0_i32 = arith.constant 0 : i32
    %14 = arith.cmpi eq, %c16_i32, %c0_i32 : i32
    %c1_i32 = arith.constant 1 : i32
    %15 = arith.select %14, %c1_i32, %c16_i32 : i32
    %16 = vector.broadcast %15 : i32 to vector<1x255xi32>
    %17 = arith.remsi %13, %16 : vector<1x255xi32>
    %c0_i32_1 = arith.constant 0 : i32
    %18 = vector.broadcast %c0_i32_1 : i32 to vector<1x255xi32>
    %19 = arith.cmpi ne, %17, %18 : vector<1x255xi32>
    %c0_i32_2 = arith.constant 0 : i32
    %20 = vector.broadcast %c0_i32_2 : i32 to vector<1x255xi32>
    %21 = arith.cmpi slt, %17, %20 : vector<1x255xi32>
    %c0_i32_3 = arith.constant 0 : i32
    %22 = arith.cmpi slt, %15, %c0_i32_3 : i32
    %23 = vector.broadcast %22 : i1 to vector<1x255xi1>
    %24 = vector.broadcast %23 : vector<1x255xi1> to vector<1x255xi1>
    %25 = arith.xori %21, %24 : vector<1x255xi1>
    %26 = arith.andi %25, %19 : vector<1x255xi1>
    %27 = vector.broadcast %15 : i32 to vector<1x255xi32>
    %28 = arith.addi %17, %27 : vector<1x255xi32>
    %29 = arith.select %26, %28, %17 : vector<1x255xi1>, vector<1x255xi32>
    %c15_i32 = arith.constant 15 : i32
    %30 = vector.broadcast %c15_i32 : i32 to vector<1x255xi32>
    %31 = arith.cmpi slt, %29, %30 : vector<1x255xi32>
    %cst_4 = arith.constant 6.78168419E-7 : f32
    %cst_5 = arith.constant 0.000000e+00 : f32
    %32 = vector.broadcast %cst_4 : f32 to vector<1x255xf32>
    %33 = vector.broadcast %cst_5 : f32 to vector<1x255xf32>
    %34 = arith.select %31, %32, %33 : vector<1x255xi1>, vector<1x255xf32>
    %35 = arith.mulf %12, %12 : vector<8x255xf32>
    %36 = vector.broadcast %34 : vector<1x255xf32> to vector<8x255xf32>
    %37 = arith.mulf %35, %36 : vector<8x255xf32>
    %38 = vector.shape_cast %37 : vector<8x255xf32> to vector<1x8x255xf32>
    %cst_6 = arith.constant dense<0.000000e+00> : vector<1xf32>
    %39 = vector.multi_reduction <add>, %38, %cst_6 [1, 2] : vector<1x8x255xf32> to vector<1xf32>
    %40 = vector.shape_cast %39 : vector<1xf32> to vector<1x1x1xf32>
    %41 = vector.extract %40[0, 0, 0] : f32 from vector<1x1x1xf32>
    %42 = vector.broadcast %41 : f32 to vector<1x1xf32>
    %cst_7 = arith.constant 6.78168419E-7 : f32
    %43 = vector.broadcast %cst_7 : f32 to vector<1x1xf32>
    %44 = arith.mulf %9, %43 : vector<1x1xf32>
    %45 = arith.addf %44, %42 : vector<1x1xf32>
    %46 = vector.shape_cast %45 : vector<1x1xf32> to vector<1x1x1xf32>
    %47 = vector.shape_cast %46 : vector<1x1x1xf32> to vector<1x1x1xf32>
    %48 = vector.broadcast %47 : vector<1x1x1xf32> to vector<1x1x128xf32>
    %c0_8 = arith.constant 0 : index
    %c0_9 = arith.constant 0 : index
    %c0_10 = arith.constant 0 : index
    %49 = vector.load %arg2[%c0_8, %c0_9, %c0_10] : memref<1x1x128xf32, #tpu.memory_space<vmem>>, vector<1x1x128xf32>
    tpu.vector_store %arg2[%c0_8, %c0_9, %c0_10], %48 {strides = array<i32>} : memref<1x1x128xf32, #tpu.memory_space<vmem>>, vector<1x1x128xf32>,
    return
  }
  func.func @transform_0(%arg0: i32) -> (i32, i32) {
    %c0_i32 = arith.constant 0 : i32
    %c0_i32_0 = arith.constant 0 : i32
    return %arg0, %c0_i32 : i32, i32
  }
  func.func @transform_1(%arg0: i32) -> (i32, i32, i32) {
    %c0_i32 = arith.constant 0 : i32
    %c0_i32_0 = arith.constant 0 : i32
    %c0_i32_1 = arith.constant 0 : i32
    return %arg0, %c0_i32, %c0_i32_0 : i32, i32, i32
  }
}

</mosaic_0001>

<bundles_post_ra>
// kernel: tpu_custom_call.1
= control target key start
LH: loop header
LB: loop body
LE: loop exit
PB: predicated region body
PF: predicated region fallthrough
CT: control target
= control target key end

     0   :  { %6 = vsyncpa [#allocation3], 0  ;;  %s255_s0 = inlined_call_operand.hbm [shape: f32[8,256], index: 0, kind: input, shape index: {}]   ;;  %s256_s1 = inlined_call_operand.hbm [shape: f32[1,1,128], index: 1, kind: output, shape index: {}]  }
   0x1   :  { %7 = vsyncpa [#allocation4], 0  ;;  %s212_s6 = smov [#allocation2]   ;;  %s164_s10 = scalar_lea.hbm %s255_s0, 256 }
   0x2   :  { %s14_s7 = sshll.u32 %s212_s6, 4  ;;  %p165_p0 = scmp.ne.s32.totalorder %s255_s0, %s164_s10  ;;  %s15_s7 = int_to_ptr.vmem [resolvable:$true] %s14_s7 }
   0x3   :  { %p168_p1 = scmp.lt.u32.totalorder %s164_s10, %s255_s0 }
   0x5   :  { %p170_p2 = pnand %p168_p1, %p165_p0 }
   0x7   :  { %173 = shalt.err (!%p170_p2)
}
   0x8   :  { %s174_s15 = scalar_lea.vmem %s15_s7, 256  ;;  %p179_p4 = scmp.lt.s32.totalorder %s15_s7, %s15_s7 }
   0x9   :  { %p175_p3 = scmp.ne.s32.totalorder %s15_s7, %s174_s15  ;;  %p180_p5 = scmp.lt.s32.totalorder %s174_s15, %s174_s15 }
   0xb   :  { %p181_p6 = por %p180_p5, %p179_p4 }
   0xd   :  { %p182_p7 = pnand %p181_p6, %p175_p3 }
   0xf   :  { %185 = shalt.err (!%p182_p7)
}
  0x10   :  { %17 = dma.hbm_to_vmem [thread:$0]  %s255_s0, 256, %s15_s7, [#allocation3]  }
  0x11   :  { %208 = dma.done.wait [#allocation3], 256  }
  0x12   :  { %209 = vsyncadd [#allocation3], 4294967040  ;;  %v69_v0 = vlaneseq  ;;  %v21_v5 = vld [vmem:[#allocation2] sm:$0xff]  ;;  %s213_s18 = smov 1   ;;  %s214_s19 = smov 16   ;;  %v22_v6 = vld [vmem:[#allocation2 + $0x8] sm:$0xff] }
  0x13   :  { %59 = vrot.lane.b32.xlu1 %v21_v5, %s213_s18  ;;  %25 = vrot.lane.b32.xlu0 %v21_v5, %s214_s19  ;;  %v215_v7 = vmov 0.0   ;;  %vm63_vm2 = vcmask 7168   ;;  %vm29_vm3 = vcmask 130048   ;;  %s216_s0 = smov 112   ;;  %s217_s20 = smov 127   ;;  %vm43_vm4 = vcmask 916480  }
  0x14   :  { %v70_v1 = vand.u32 127, %v69_v0  ;;  %vm119_vm5 = vcmask 1039360   ;;  %s218_s22 = smov [#allocation5]  }
  0x15   :  { %s144_s23 = sshll.u32 %s218_s22, 4  ;;  %s145_s23 = int_to_ptr.vmem [resolvable:$true] %s144_s23 }
  0x16   :  { %v71_v2 = vadd.s32 128, %v70_v1  ;;  %v76_v4 = vand.u32 15, %v70_v1  ;;  %s186_s25 = scalar_lea.vmem %s145_s23, 16  ;;  %s190_s26 = scalar_lea.vmem %s145_s23, 32 }
  0x17   :  { %61 = vrot.lane.b32.xlu1 %v22_v6, %s213_s18  ;;  %27 = vrot.lane.b32.xlu0 %v22_v6, %s214_s19  ;;  %p187_p8 = scmp.ne.s32.totalorder %s145_s23, %s186_s25  ;;  %p191_p9 = scmp.lt.s32.totalorder %s145_s23, %s145_s23 }
  0x18   :  { %v83_v3 = vand.u32 15, %v71_v2  ;;  %vm96_vm1 = vcmp.lt.s32.totalorder %v76_v4, 15  ;;  %p192_p10 = scmp.lt.s32.totalorder %s190_s26, %s186_s25 }
  0x19   :  { %v98_v9 = vsel %vm96_vm1, 6.781684e-07, %v215_v7 }
  0x1a   :  { %vm97_vm0 = vcmp.lt.s32.totalorder %v83_v3, 15  ;;  %p193_p11 = por %p192_p10, %p191_p9 }
  0x1b   :  { %v99_v8 = vsel %vm97_vm0, 6.781684e-07, %v215_v7  ;;  %104 = vrot.lane.b32.xlu0 %v98_v9, %s213_s18 }
  0x1c   :  { %106 = vrot.lane.b32.xlu1 %v99_v8, %s213_s18  ;;  %p194_p12 = pnand %p193_p11, %p187_p8 }
  0x85   :  { %v60_v10 = vpop.permute.xlu1 %59  ;;  %v26_v11 = vpop.permute.xlu0 %25 }
  0x86   :  { %v33_v12 = vsub.f32 %v21_v5, %v26_v11  ;;  %v67_v13 = vsub.f32 %v21_v5, %v60_v10 }
  0x88   :  { %v35_v14 = vmul.f32 %v33_v12, %v33_v12  ;;  %v100_v21 = vmul.f32 %v67_v13, %v67_v13 }
  0x89   :  { %v62_v15 = vpop.permute.xlu1 %61  ;;  %v28_v16 = vpop.permute.xlu0 %27 }
  0x8a   :  { %v64_v17 = vsel %vm63_vm2, %v60_v10, %v62_v15  ;;  %v30_v18 = vsel %vm29_vm3, %v26_v11, %v28_v16  ;;  %39 = vrot.lane.b32.xlu0 %v35_v14, %s216_s0 }
  0x8b   :  { %v68_v19 = vsub.f32 %v22_v6, %v64_v17  ;;  %v34_v20 = vsub.f32 %v22_v6, %v30_v18 }
  0x8d   :  { %v101_v22 = vmul.f32 %v68_v19, %v68_v19  ;;  %v36_v23 = vmul.f32 %v34_v20, %v34_v20  ;;  %v105_v25 = vpop.permute.xlu0 %104 }
  0x8e   :  { %v107_v24 = vpop.permute.xlu1 %106  ;;  %v111_v27 = vmul.f32 %v105_v25, %v100_v21 }
  0x8f   :  { %v108_v26 = vsel %vm63_vm2, %v105_v25, %v107_v24  ;;  %41 = vrot.lane.b32.xlu1 %v36_v23, %s216_s0 }
  0x90   :  { %115 = vrot.lane.b32.xlu0 %v111_v27, %s217_s20  ;;  %v112_v28 = vmul.f32 %v108_v26, %v101_v22 }
  0x93   :  { %117 = vrot.lane.b32.xlu1 %v112_v28, %s217_s20 }
  0xfc   :  { %v40_v29 = vpop.permute.xlu0 %39 }
 0x101   :  { %v42_v30 = vpop.permute.xlu1 %41 }
 0x102   :  { %v44_v31 = vsel %vm43_vm4, %v40_v29, %v42_v30  ;;  %v47_v32 = vsel %vm43_vm4, %v42_v30, 0.0  ;;  %v116_v34 = vpop.permute.xlu0 %115 }
 0x103   :  { %v48_v33 = vadd.f32 %v47_v32, %v44_v31 }
 0x105   :  { %v118_v35 = vpop.permute.xlu1 %117  ;;  %49 = vadd.xlane.f32.xlu0 %v48_v33 }
 0x106   :  { %v120_v36 = vsel %vm119_vm5, %v116_v34, %v118_v35  ;;  %v123_v37 = vsel %vm119_vm5, %v118_v35, 0.0 }
 0x107   :  { %v124_v38 = vadd.f32 %v123_v37, %v120_v36 }
 0x109   :  { %125 = vadd.xlane.f32.xlu1 %v124_v38 }
 0x192   :  { %v50_v39 = vpop.xlane.xlu0 %49 }
 0x193   :  { %v51_v40 = vrot.slane %v50_v39, 4 }
 0x195   :  { %v52_v41 = vadd.f32 %v51_v40, %v50_v39 }
 0x196   :  { %v126_v42 = vpop.xlane.xlu1 %125 }
 0x197   :  { %v53_v43 = vrot.slane %v52_v41, 2  ;;  %v127_v44 = vrot.slane %v126_v42, 4 }
 0x199   :  { %v128_v45 = vadd.f32 %v127_v44, %v126_v42  ;;  %v54_v46 = vadd.f32 %v53_v43, %v52_v41 }
 0x19b   :  { %v129_v47 = vrot.slane %v128_v45, 2  ;;  %v55_v48 = vrot.slane %v54_v46, 1 }
 0x19d   :  { %v130_v49 = vadd.f32 %v129_v47, %v128_v45  ;;  %v56_v50 = vadd.f32 %v55_v48, %v54_v46 }
 0x19f   :  { %153 = vpush %v56_v50  ;;  %v131_v51 = vrot.slane %v130_v49, 1 }
 0x1a1   :  { %v132_v52 = vadd.f32 %v131_v51, %v130_v49 }
 0x1a3   :  { %155 = vpush %v132_v52 }
 0x1d0   :  { %s154_s21 = spop %153 }
 0x1d1   :  { %v58_v53 = vstv %s154_s21 }
 0x1d2   :  { %v135_v54 = vmul.f32 6.781684e-07, %v58_v53 }
 0x1d4   :  { %s156_s24 = spop %155 }
 0x1d5   :  { %v134_v55 = vstv %s156_s24 }
 0x1d6   :  { %v136_v56 = vadd.f32 %v135_v54, %v134_v55 }
 0x1d8   :  { %137 = vst [vmem:[#allocation5] sm:$0x1] %v136_v56 }
 0x1d9   :  { %197 = shalt.err (!%p194_p12)
}
 0x1da   :  { %s198_s29 = scalar_lea.hbm %s256_s1, 16 }
 0x1db   :  { %p199_p13 = scmp.ne.s32.totalorder %s256_s1, %s198_s29  ;;  %p202_p0 = scmp.lt.u32.totalorder %s198_s29, %s256_s1 }
 0x1dd   :  { %p204_p1 = pnand %p202_p0, %p199_p13 }
 0x1df   :  { %207 = shalt.err (!%p204_p1)
}
 0x1e0   :  { %147 = dma.vmem_to_hbm [thread:$0]  %s145_s23, 16, %s256_s1, [#allocation4]  }
 0x1e1   :  { %210 = dma.done.wait [#allocation4], 16  }
 0x1e2   :  { %211 = vsyncadd [#allocation4], 4294967280 }
 0x1e3   :  { %151 = vsyncpa [#allocation3], 1 }
 0x1e4   :  { %152 = vsyncpa [#allocation4], 1 }

</bundles_post_ra>
